<compile_context>
chip_gen: v7x
topology: tpu7x:2x2x1
jax: 0.10.0
libtpu: 0.0.40
codegen_flags: <defaults>
</compile_context>

<pallas_src>
import jax
import jax.numpy as jnp
from jax.experimental import pallas as pl
from jax.experimental.pallas import tpu as pltpu


# ---------------------------------------------------------------------------
# Shared cell math (traced inside both kernels).
# ---------------------------------------------------------------------------
def _gate_activations(gates, is_tanh):
    """One EUP pass over the whole (B, 4H) block.

    sigmoid(x) = 0.5 * tanh(0.5 * x) + 0.5, so one tanh (with the g-gate lanes
    fed x instead of 0.5*x) covers all four gates; a lane-mask select picks the
    right post-processing per gate.
    """
    pre = jnp.where(is_tanh, gates, 0.5 * gates)
    t = jnp.tanh(pre)
    return jnp.where(is_tanh, t, 0.5 * t + 0.5)


def _lstm_cell(emb, h, c, wg, bg, is_tanh):
    """Fused LSTM cell: [emb, h] @ concat([Wih, Whh]) + (bih + bhh)."""
    H = h.shape[-1]
    z = jnp.concatenate([emb, h], axis=-1)            # lane concat (XLU, cheap)
    gates = jnp.dot(z, wg, preferred_element_type=jnp.float32) + bg
    act = _gate_activations(gates, is_tanh)
    i_g = act[:, 0:H]
    f_g = act[:, H:2 * H]
    g_g = act[:, 2 * H:3 * H]
    o_g = act[:, 3 * H:4 * H]
    c_new = f_g * c + i_g * g_g
    h_new = o_g * jnp.tanh(c_new)
    return h_new, c_new


# ---------------------------------------------------------------------------
# Single-step kernel (matches DecoderRNN.forward exactly).
# ---------------------------------------------------------------------------
def decoder_step_kernel(x_ref, h_ref, c_ref,
                        w1_ref, b1_ref, wg_ref, bg_ref, w2_ref, b2_ref,
                        out_ref, h_out_ref, c_out_ref):
    B, H = h_ref.shape
    lane = jax.lax.broadcasted_iota(jnp.int32, (B, 4 * H), 1)
    is_tanh = (lane >= 2 * H) & (lane < 3 * H)

    # linear1 + relu
    emb = jnp.maximum(
        jnp.dot(x_ref[...], w1_ref[...], preferred_element_type=jnp.float32)
        + b1_ref[...], 0.0)

    h_new, c_new = _lstm_cell(emb, h_ref[...], c_ref[...],
                              wg_ref[...], bg_ref[...], is_tanh)

    # linear2
    out_ref[...] = jnp.dot(h_new, w2_ref[...],
                           preferred_element_type=jnp.float32) + b2_ref[...]
    h_out_ref[...] = h_new
    c_out_ref[...] = c_new


def decoder_rnn(x, hidden, fp):
    """Pallas wrapper mirroring DecoderRNN.forward(x, hidden) -> (output, (h, c)).

    NOTE: per-call dispatch overhead dwarfs this sub-microsecond kernel; do not
    drive an autoregressive loop through this entry point — use
    decoder_rnn_decode instead.
    """
    h, c = hidden
    B = x.shape[0]
    H = h.shape[1]
    E = fp["w1"].shape[1]
    O = fp["w2"].shape[1]

    vmem = pl.BlockSpec(memory_space=pltpu.MemorySpace.VMEM)

    flops = 2 * B * (O * E + (E + H) * 4 * H + H * O)
    transcendentals = B * (4 * H + H)                       # gate tanh pass + tanh(c)
    bytes_accessed = 4 * (2 * B * O + 4 * B * H
                          + O * E + E
                          + (E + H) * 4 * H + 4 * H
                          + H * O + O)

    out, h_new, c_new = pl.pallas_call(
        decoder_step_kernel,
        out_shape=(
            jax.ShapeDtypeStruct((B, O), jnp.float32),
            jax.ShapeDtypeStruct((B, H), jnp.float32),
            jax.ShapeDtypeStruct((B, H), jnp.float32),
        ),
        in_specs=[vmem] * 9,
        out_specs=(vmem, vmem, vmem),
        cost_estimate=pl.CostEstimate(flops=flops,
                                      transcendentals=transcendentals,
                                      bytes_accessed=bytes_accessed),
    )(x, h, c, fp["w1"], fp["b1"], fp["wg"], fp["bg"], fp["w2"], fp["b2"])
    return out, (h_new, c_new)


# ---------------------------------------------------------------------------
# T-step autoregressive decode: ONE pallas_call, in-kernel unrolled loop,
# deferred linear2, single output store.
# ---------------------------------------------------------------------------
def decoder_decode_kernel(x0_ref, h0_ref, c0_ref,
                          w1_ref, b1_ref, wg_ref, bg_ref,
                          w21_ref, b21_ref, w2_ref, b2_ref,
                          out_ref, h_out_ref, c_out_ref,
                          h_hist):
    B, H = h0_ref.shape
    E = w1_ref.shape[1]
    num_steps = h_hist.shape[0] // B

    # --- hoisted loop invariants (JAX does not CSE broadcast_in_dim) ---------
    w1 = w1_ref[...]
    wg = wg_ref[...]
    w21 = w21_ref[...]
    b1 = jnp.broadcast_to(b1_ref[...], (B, E))
    bg = jnp.broadcast_to(bg_ref[...], (B, 4 * H))
    b21 = jnp.broadcast_to(b21_ref[...], (B, E))
    lane = jax.lax.broadcasted_iota(jnp.int32, (B, 4 * H), 1)
    is_tanh = (lane >= 2 * H) & (lane < 3 * H)

    # --- step 0: the external x0 goes through linear1 ------------------------
    emb0 = jnp.maximum(
        jnp.dot(x0_ref[...], w1, preferred_element_type=jnp.float32) + b1, 0.0)
    h, c = _lstm_cell(emb0, h0_ref[...], c0_ref[...], wg, bg, is_tanh)
    h_hist[pl.ds(0, B), :] = h

    # --- steps 1..T-1: feedback out_{t-1} = h_{t-1}@w2+b2 folded into linear1
    #     via w21 = w2@w1, b21 = b2@w1 + b1 (one dependent matmul per step). ---
    def body(t, carry):
        h_prev, c_prev = carry
        emb = jnp.maximum(
            jnp.dot(h_prev, w21, preferred_element_type=jnp.float32) + b21, 0.0)
        h_new, c_new = _lstm_cell(emb, h_prev, c_prev, wg, bg, is_tanh)
        start = t * B
        if B % 8 == 0:
            start = pl.multiple_of(start, 8)   # sublane-aligned dynamic store
        h_hist[pl.ds(start, B), :] = h_new
        return (h_new, c_new)

    h, c = jax.lax.fori_loop(1, num_steps, body, (h, c), unroll=True)

    h_out_ref[...] = h
    c_out_ref[...] = c

    # --- deferred linear2: one (T*B, H) @ (H, O) matmul + one output store ---
    out_ref[...] = jnp.dot(h_hist[...], w2_ref[...],
                           preferred_element_type=jnp.float32) + b2_ref[...]


def decoder_rnn_decode(x0, hidden, fp, num_steps):
    """Run the decoder autoregressively for num_steps inside one pallas_call."""
    assert num_steps >= 1
    h0, c0 = hidden
    B, O = x0.shape
    H = h0.shape[1]
    E = fp["w1"].shape[1]

    vmem = pl.BlockSpec(memory_space=pltpu.MemorySpace.VMEM)

    flops = 2 * B * (O * E                                  # step-0 linear1
                     + num_steps * (E + H) * 4 * H          # fused gate matmuls
                     + (num_steps - 1) * H * E              # folded feedback (w21)
                     + num_steps * H * O)                   # deferred linear2
    transcendentals = num_steps * B * (4 * H + H)
    bytes_accessed = 4 * (B * O + 4 * B * H + num_steps * B * O
                          + O * E + E + (E + H) * 4 * H + 4 * H
                          + H * E + E + H * O + O)

    outs_flat, hT, cT = pl.pallas_call(
        decoder_decode_kernel,
        out_shape=(
            jax.ShapeDtypeStruct((num_steps * B, O), jnp.float32),
            jax.ShapeDtypeStruct((B, H), jnp.float32),
            jax.ShapeDtypeStruct((B, H), jnp.float32),
        ),
        in_specs=[vmem] * 11,
        out_specs=(vmem, vmem, vmem),
        scratch_shapes=[pltpu.VMEM((num_steps * B, H), jnp.float32)],  # h history
        cost_estimate=pl.CostEstimate(flops=flops,
                                      transcendentals=transcendentals,
                                      bytes_accessed=bytes_accessed),
    )(x0, h0, c0,
      fp["w1"], fp["b1"], fp["wg"], fp["bg"],
      fp["w21"], fp["b21"], fp["w2"], fp["b2"])
    return outs_flat.reshape(num_steps, B, O), (hT, cT)


# ---------------------------------------------------------------------------
# Parameters & pure-JAX reference.
# ---------------------------------------------------------------------------
def init_params(key, embedding_size=8, hidden_size=16, output_size=2):
    """Deterministic synthetic parameters (same shapes as the PyTorch module)."""
    ks = jax.random.split(key, 8)
    scale = 0.1
    # nn.Linear(output_size, embedding_size): weight (emb, out) -> stored (out, emb)
    w1 = scale * jax.random.normal(ks[0], (output_size, embedding_size), jnp.float32)
    b1 = scale * jax.random.normal(ks[1], (1, embedding_size), jnp.float32)
    # nn.LSTMCell(embedding_size, hidden_size), gate order i,f,g,o:
    #   weight_ih (4H, emb) -> (emb, 4H); weight_hh (4H, H) -> (H, 4H)
    wih = scale * jax.random.normal(ks[2], (embedding_size, 4 * hidden_size), jnp.float32)
    bih = scale * jax.random.normal(ks[3], (1, 4 * hidden_size), jnp.float32)
    whh = scale * jax.random.normal(ks[4], (hidden_size, 4 * hidden_size), jnp.float32)
    bhh = scale * jax.random.normal(ks[5], (1, 4 * hidden_size), jnp.float32)
    # nn.Linear(hidden_size, output_size): weight (out, H) -> (H, out)
    w2 = scale * jax.random.normal(ks[6], (hidden_size, output_size), jnp.float32)
    b2 = scale * jax.random.normal(ks[7], (1, output_size), jnp.float32)
    return dict(w1=w1, b1=b1, wih=wih, bih=bih, whh=whh, bhh=bhh, w2=w2, b2=b2)


def fuse_gate_params(p):
    """Pre-stack LSTM gate weights and pre-fold linear2->linear1 for decode."""
    return dict(
        w1=p["w1"], b1=p["b1"],
        wg=jnp.concatenate([p["wih"], p["whh"]], axis=0),    # (emb+H, 4H)
        bg=p["bih"] + p["bhh"],                               # (1, 4H)
        w2=p["w2"], b2=p["b2"],
        w21=p["w2"] @ p["w1"],                                # (H, emb)
        b21=p["b2"] @ p["w1"] + p["b1"],                      # (1, emb)
    )


def reference(x, hidden, p):
    """Pure-JAX reference of the PyTorch forward pass (unfused weights)."""
    h, c = hidden
    H = h.shape[1]
    emb = jnp.maximum(x @ p["w1"] + p["b1"], 0.0)
    gates = emb @ p["wih"] + p["bih"] + h @ p["whh"] + p["bhh"]
    i = jax.nn.sigmoid(gates[:, 0:H])
    f = jax.nn.sigmoid(gates[:, H:2 * H])
    g = jnp.tanh(gates[:, 2 * H:3 * H])
    o = jax.nn.sigmoid(gates[:, 3 * H:4 * H])
    c_new = f * c + i * g
    h_new = o * jnp.tanh(c_new)
    out = h_new @ p["w2"] + p["b2"]
    return out, (h_new, c_new)


if __name__ == "__main__":
    embedding_size, hidden_size, output_size = 8, 16, 2
    batch = 8          # multiple of 8 so the batch axis fills TPU sublanes
    num_steps = 8

    key = jax.random.PRNGKey(0)
    kx, kh, kc, kp = jax.random.split(key, 4)

    params = init_params(kp, embedding_size, hidden_size, output_size)
    fused = fuse_gate_params(params)

    x = jax.random.normal(kx, (batch, output_size), jnp.float32)
    h0 = jax.random.normal(kh, (batch, hidden_size), jnp.float32)
    c0 = jax.random.normal(kc, (batch, hidden_size), jnp.float32)

    # --- single step: matches DecoderRNN.forward exactly ---------------------
    out, (h1, c1) = decoder_rnn(x, (h0, c0), fused)
    jax.block_until_ready((out, h1, c1))

    ref_out, (ref_h, ref_c) = reference(x, (h0, c0), params)
    assert jnp.allclose(out, ref_out, atol=1e-5), "output mismatch"
    assert jnp.allclose(h1, ref_h, atol=1e-5), "h mismatch"
    assert jnp.allclose(c1, ref_c, atol=1e-5), "c mismatch"

    # --- T-step autoregressive decode fused into one pallas_call -------------
    outs, (hT, cT) = decoder_rnn_decode(x, (h0, c0), fused, num_steps)
    jax.block_until_ready((outs, hT, cT))

    rx, rh, rc = x, h0, c0
    ref_outs = []
    for _ in range(num_steps):
        ro, (rh, rc) = reference(rx, (rh, rc), params)
        ref_outs.append(ro)
        rx = ro
    ref_outs = jnp.stack(ref_outs, axis=0)
    assert jnp.allclose(outs, ref_outs, atol=1e-4), "decode output mismatch"
    assert jnp.allclose(hT, rh, atol=1e-4), "decode h mismatch"
    assert jnp.allclose(cT, rc, atol=1e-4), "decode c mismatch"

    print("KERNEL_OK")
</pallas_src>

<mosaic_0001>
module attributes {stable_mosaic.version = 11 : i64} {
  func.func @decoder_step_kernel(%arg0: memref<8x2xf32, #tpu.memory_space<vmem>>, %arg1: memref<8x16xf32, #tpu.memory_space<vmem>>, %arg2: memref<8x16xf32, #tpu.memory_space<vmem>>, %arg3: memref<2x8xf32, #tpu.memory_space<vmem>>, %arg4: memref<1x8xf32, #tpu.memory_space<vmem>>, %arg5: memref<24x64xf32, #tpu.memory_space<vmem>>, %arg6: memref<1x64xf32, #tpu.memory_space<vmem>>, %arg7: memref<16x2xf32, #tpu.memory_space<vmem>>, %arg8: memref<1x2xf32, #tpu.memory_space<vmem>>, %arg9: memref<8x2xf32, #tpu.memory_space<vmem>>, %arg10: memref<8x16xf32, #tpu.memory_space<vmem>>, %arg11: memref<8x16xf32, #tpu.memory_space<vmem>>) attributes {dimension_semantics = [], scalar_prefetch = 0 : i64, scratch_operands = 0 : i64, tpu.core_type = #tpu.core_type<tc>} {
    %0 = tpu.iota {dimensions = array<i32: 1>} : vector<8x64xi32>
    %c32_i32 = arith.constant 32 : i32
    %1 = vector.broadcast %c32_i32 : i32 to vector<8x64xi32>
    %2 = arith.cmpi sge, %0, %1 : vector<8x64xi32>
    %c48_i32 = arith.constant 48 : i32
    %3 = vector.broadcast %c48_i32 : i32 to vector<8x64xi32>
    %4 = arith.cmpi slt, %0, %3 : vector<8x64xi32>
    %5 = arith.andi %2, %4 : vector<8x64xi1>
    %c0 = arith.constant 0 : index
    %c0_0 = arith.constant 0 : index
    %6 = vector.load %arg0[%c0, %c0_0] : memref<8x2xf32, #tpu.memory_space<vmem>>, vector<8x2xf32>
    %c0_1 = arith.constant 0 : index
    %c0_2 = arith.constant 0 : index
    %7 = vector.load %arg3[%c0_1, %c0_2] : memref<2x8xf32, #tpu.memory_space<vmem>>, vector<2x8xf32>
    %cst = arith.constant dense<0.000000e+00> : vector<8x8xf32>
    %8 = tpu.matmul %6, %7, %cst {dimension_numbers = #tpu.dot_dimension_numbers<[1], [0], [0], [1], [0, 0, 1, 1], [], []>} : vector<8x2xf32>, vector<2x8xf32>, vector<8x8xf32> -> vector<8x8xf32>
    %c0_3 = arith.constant 0 : index
    %c0_4 = arith.constant 0 : index
    %9 = vector.load %arg4[%c0_3, %c0_4] : memref<1x8xf32, #tpu.memory_space<vmem>>, vector<1x8xf32>
    %10 = vector.broadcast %9 : vector<1x8xf32> to vector<8x8xf32>
    %11 = arith.addf %8, %10 : vector<8x8xf32>
    %cst_5 = arith.constant 0.000000e+00 : f32
    %12 = vector.broadcast %cst_5 : f32 to vector<8x8xf32>
    %13 = arith.maximumf %11, %12 : vector<8x8xf32>
    %c0_6 = arith.constant 0 : index
    %c0_7 = arith.constant 0 : index
    %14 = vector.load %arg1[%c0_6, %c0_7] : memref<8x16xf32, #tpu.memory_space<vmem>>, vector<8x16xf32>
    %c0_8 = arith.constant 0 : index
    %c0_9 = arith.constant 0 : index
    %15 = vector.load %arg2[%c0_8, %c0_9] : memref<8x16xf32, #tpu.memory_space<vmem>>, vector<8x16xf32>
    %c0_10 = arith.constant 0 : index
    %c0_11 = arith.constant 0 : index
    %16 = vector.load %arg5[%c0_10, %c0_11] : memref<24x64xf32, #tpu.memory_space<vmem>>, vector<24x64xf32>
    %c0_12 = arith.constant 0 : index
    %c0_13 = arith.constant 0 : index
    %17 = vector.load %arg6[%c0_12, %c0_13] : memref<1x64xf32, #tpu.memory_space<vmem>>, vector<1x64xf32>
    %18 = tpu.concatenate %13, %14 in 1 : vector<8x8xf32>, vector<8x16xf32> -> vector<8x24xf32>
    %cst_14 = arith.constant dense<0.000000e+00> : vector<8x64xf32>
    %19 = tpu.matmul %18, %16, %cst_14 {dimension_numbers = #tpu.dot_dimension_numbers<[1], [0], [0], [1], [0, 0, 1, 1], [], []>} : vector<8x24xf32>, vector<24x64xf32>, vector<8x64xf32> -> vector<8x64xf32>
    %20 = vector.broadcast %17 : vector<1x64xf32> to vector<8x64xf32>
    %21 = arith.addf %19, %20 : vector<8x64xf32>
    %cst_15 = arith.constant 5.000000e-01 : f32
    %22 = vector.broadcast %cst_15 : f32 to vector<8x64xf32>
    %23 = arith.mulf %22, %21 : vector<8x64xf32>
    %24 = arith.select %5, %21, %23 : vector<8x64xi1>, vector<8x64xf32>
    %25 = math.tanh %24 : vector<8x64xf32>
    %cst_16 = arith.constant 5.000000e-01 : f32
    %26 = vector.broadcast %cst_16 : f32 to vector<8x64xf32>
    %27 = arith.mulf %26, %25 : vector<8x64xf32>
    %cst_17 = arith.constant 5.000000e-01 : f32
    %28 = vector.broadcast %cst_17 : f32 to vector<8x64xf32>
    %29 = arith.addf %27, %28 : vector<8x64xf32>
    %30 = arith.select %5, %25, %29 : vector<8x64xi1>, vector<8x64xf32>
    %31 = vector.extract_strided_slice %30 {offsets = [0, 0], sizes = [8, 16], strides = [1, 1]} : vector<8x64xf32> to vector<8x16xf32>
    %32 = vector.extract_strided_slice %30 {offsets = [0, 16], sizes = [8, 16], strides = [1, 1]} : vector<8x64xf32> to vector<8x16xf32>
    %33 = vector.extract_strided_slice %30 {offsets = [0, 32], sizes = [8, 16], strides = [1, 1]} : vector<8x64xf32> to vector<8x16xf32>
    %34 = vector.extract_strided_slice %30 {offsets = [0, 48], sizes = [8, 16], strides = [1, 1]} : vector<8x64xf32> to vector<8x16xf32>
    %35 = arith.mulf %32, %15 : vector<8x16xf32>
    %36 = arith.mulf %31, %33 : vector<8x16xf32>
    %37 = arith.addf %35, %36 : vector<8x16xf32>
    %38 = math.tanh %37 : vector<8x16xf32>
    %39 = arith.mulf %34, %38 : vector<8x16xf32>
    %c0_18 = arith.constant 0 : index
    %c0_19 = arith.constant 0 : index
    %40 = vector.load %arg7[%c0_18, %c0_19] : memref<16x2xf32, #tpu.memory_space<vmem>>, vector<16x2xf32>
    %cst_20 = arith.constant dense<0.000000e+00> : vector<8x2xf32>
    %41 = tpu.matmul %39, %40, %cst_20 {dimension_numbers = #tpu.dot_dimension_numbers<[1], [0], [0], [1], [0, 0, 1, 1], [], []>} : vector<8x16xf32>, vector<16x2xf32>, vector<8x2xf32> -> vector<8x2xf32>
    %c0_21 = arith.constant 0 : index
    %c0_22 = arith.constant 0 : index
    %42 = vector.load %arg8[%c0_21, %c0_22] : memref<1x2xf32, #tpu.memory_space<vmem>>, vector<1x2xf32>
    %43 = vector.broadcast %42 : vector<1x2xf32> to vector<8x2xf32>
    %44 = arith.addf %41, %43 : vector<8x2xf32>
    %c0_23 = arith.constant 0 : index
    %c0_24 = arith.constant 0 : index
    %45 = vector.load %arg9[%c0_23, %c0_24] : memref<8x2xf32, #tpu.memory_space<vmem>>, vector<8x2xf32>
    tpu.vector_store %arg9[%c0_23, %c0_24], %44 {strides = array<i32>} : memref<8x2xf32, #tpu.memory_space<vmem>>, vector<8x2xf32>,
    %c0_25 = arith.constant 0 : index
    %c0_26 = arith.constant 0 : index
    %46 = vector.load %arg10[%c0_25, %c0_26] : memref<8x16xf32, #tpu.memory_space<vmem>>, vector<8x16xf32>
    tpu.vector_store %arg10[%c0_25, %c0_26], %39 {strides = array<i32>} : memref<8x16xf32, #tpu.memory_space<vmem>>, vector<8x16xf32>,
    %c0_27 = arith.constant 0 : index
    %c0_28 = arith.constant 0 : index
    %47 = vector.load %arg11[%c0_27, %c0_28] : memref<8x16xf32, #tpu.memory_space<vmem>>, vector<8x16xf32>
    tpu.vector_store %arg11[%c0_27, %c0_28], %37 {strides = array<i32>} : memref<8x16xf32, #tpu.memory_space<vmem>>, vector<8x16xf32>,
    return
  }
}

</mosaic_0001>

<bundles_post_ra>
// kernel: tpu_custom_call.1
= control target key start
LH: loop header
LB: loop body
LE: loop exit
PB: predicated region body
PF: predicated region fallthrough
CT: control target
= control target key end

     0   :  { %17 = vsyncpa [#allocation3], 0  ;;  %vm55_vm0 = vcmask 1041408   ;;  %v480_v2 = vmov 0.0   ;;  %vm481_vm1 = vmmov 0   ;;  %vm51_vm2 = vcmask 15360   ;;  %s618_s0 = inlined_call_operand.vmem [shape: f32[8,2], index: 0, kind: input, shape index: {}]   ;;  %s619_s1 = inlined_call_operand.vmem [shape: f32[8,16], index: 1, kind: input, shape index: {}]   ;;  %s620_s2 = inlined_call_operand.vmem [shape: f32[8,16], index: 2, kind: input, shape index: {}]   ;;  %s621_s3 = inlined_call_operand.vmem [shape: f32[2,8], index: 3, kind: input, shape index: {}]   ;;  %s622_s4 = inlined_call_operand.vmem [shape: f32[1,8], index: 4, kind: input, shape index: {}]   ;;  %s623_s5 = inlined_call_operand.vmem [shape: f32[24,64], index: 5, kind: input, shape index: {}]   ;;  %s624_s6 = inlined_call_operand.vmem [shape: f32[1,64], index: 6, kind: input, shape index: {}]   ;;  %s625_s7 = inlined_call_operand.vmem [shape: f32[16,2], index: 7, kind: input, shape index: {}]   ;;  %s626_s8 = inlined_call_operand.vmem [shape: f32[1,2], index: 8, kind: input, shape index: {}]   ;;  %s627_s9 = inlined_call_operand.vmem [shape: f32[8,2], index: 9, kind: output, shape index: {0}]   ;;  %s628_s10 = inlined_call_operand.hbm [shape: f32[8,16], index: 10, kind: output, shape index: {1}]   ;;  %s629_s11 = inlined_call_operand.hbm [shape: f32[8,16], index: 11, kind: output, shape index: {2}]  }
   0x1   :  { %v43_v0 = vld [vmem:[%s621_s3] sm:$0x3]  ;;  %390 = vmatprep.subr.mxu0 %v480_v2  ;;  %392 = vmatprep.mubr.msk.f32.mxu0 %vm481_vm1, %v480_v2  ;;  %s482_s23 = smov 8  }
   0x2   :  { %v42_v1 = vld [vmem:[%s618_s0] sm:$0xff]  ;;  %391 = vmatpush3.msk.msra.mxu0 %vm55_vm0, %v43_v0 }
   0x3   :  { %v130_v3 = vld [vmem:[%s619_s1] sm:$0xff] }
   0x4   :  { %137 = vrot.lane.b32.xlu0 %v130_v3, %s482_s23 }
   0x5   :  { %18 = vsyncpa [#allocation5], 0  ;;  %393 = vmatmul.mubr.msk.f32.vlgmr.msra.gmra.mrb[0].mxu0 %vm51_vm2, %v42_v1  ;;  %401 = vmatprep.mubr.msk.f32.mxu1 %vm481_vm1, %v480_v2  ;;  %v132_v4 = vld [vmem:[%s623_s5] sm:$0xff]  ;;  %v133_v5 = vld [vmem:[%s623_s5 + $0x8] sm:$0xff]  ;;  %v483_v7 = vmov 0.0|0.0   ;;  %s484_s29 = smov 16   ;;  %v37_v17 = vlaneseq }
   0x6   :  { %408 = vmatprep.mubr.msk.f32.mxu0 %vm481_vm1, %v480_v2  ;;  %v412_v6 = vpack.c.bf16 %v133_v5, %v132_v4  ;;  %411 = vmatprep.subr.bf16.mxu1 %v483_v7  ;;  %v134_v8 = vld [vmem:[%s623_s5 + $0x10] sm:$0xff]  ;;  %v131_v9 = vld [vmem:[%s620_s2] sm:$0xff]  ;;  %vm140_vm3 = vcmask 64512   ;;  %vm148_vm4 = vcmask 195584   ;;  %v250_v36 = vld [vmem:[%s625_s7 + $0x8] sm:$0xff]  ;;  %s486_s16 = smov 32  }
   0x7   :  { %414 = vmatprep.subr.bf16.mxu0 %v483_v7  ;;  %229 = vrot.lane.b32.xlu1 %v131_v9, %s484_s29  ;;  %v374_v10 = vld [vmem:[%s622_s4] ss:$0 sm:$0xff]  ;;  %v38_v18 = vand.u32 127, %v37_v17  ;;  %s485_s4 = smov 96   ;;  %s487_s17 = smov 112   ;;  %vm261_vm8 = vcmask 130048  }
   0x8   :  { %413 = vmatpush3.bf16.msra.mxu1 %v412_v6  ;;  %v377_v19 = vld [vmem:[%s624_s6] ss:$0 sm:$0xff]  ;;  %s488_s18 = smov 80   ;;  %s489_s19 = smov [#allocation2]  }
   0x9   :  { %399 = vmatprep.subr.mxu1 %v480_v2  ;;  %vm39_vm5 = vcmp.ge.s32.totalorder %v38_v18, 32  ;;  %vm40_vm6 = vcmp.lt.s32.totalorder %v38_v18, 48  ;;  %v249_v35 = vld [vmem:[%s625_s7] sm:$0xff]  ;;  %s350_s20 = sshll.u32 %s489_s19, 4  ;;  %s490_s7 = smov [#allocation4]   ;;  %s351_s20 = int_to_ptr.vmem [resolvable:$true] %s350_s20 }
   0xa   :  { %vm41_vm7 = vmand %vm39_vm5, %vm40_vm6  ;;  %v415_v37 = vpack.c.bf16 %v250_v36, %v249_v35  ;;  %s360_s21 = sshll.u32 %s490_s7, 4  ;;  %s432_s22 = scalar_lea.vmem %s351_s20, 128  ;;  %s361_s21 = int_to_ptr.vmem [resolvable:$true] %s360_s21 }
   0xb   :  { %p433_p0 = scmp.ne.s32.totalorder %s351_s20, %s432_s22  ;;  %p437_p1 = scmp.lt.s32.totalorder %s351_s20, %s351_s20 }
   0xc   :  { %400 = vmatpush3.msra.mxu1 %v134_v8  ;;  %416 = vmatpush3.bf16.msra.mxu0 %v415_v37  ;;  %p438_p2 = scmp.lt.s32.totalorder %s432_s22, %s432_s22 }
   0xe   :  { %p439_p3 = por %p438_p2, %p437_p1 }
  0x10   :  { %p440_p4 = pnand %p439_p3, %p433_p0 }
  0x76   :  { %v138_v14 = vpop.permute.xlu0 %137 }
  0x79   :  { %v230_v31 = vpop.permute.xlu1 %229 }
  0xd8   :  { %v125_v11 = vpop.f32.mrb[0].mxu0 }
  0xd9   :  { %v126_v12 = vadd.f32 %v374_v10, %v125_v11  ;;  %v394_v13 = vpop.f32.mrb[1].mxu0 }
  0xdb   :  { %v129_v15 = vmax.f32 %v126_v12, 0.0 }
  0xdd   :  { %v141_v16 = vsel %vm140_vm3, %v129_v15, %v138_v14 }
  0xde   :  { %402 = vmatmul.mubr.msk.f32.vlgmr.msra.gmra.mrb[0].mxu1 %vm148_vm4, %v141_v16 }
 0x1b1   :  { %v218_v20 = vpop.f32.mrb[0].mxu1 }
 0x1b2   :  { %v219_v21 = vadd.f32 %v377_v19, %v218_v20  ;;  %v403_v22 = vpop.f32.mrb[1].mxu1 }
 0x1b4   :  { %v222_v23 = vmul.f32 0.5, %v219_v21 }
 0x1b6   :  { %v223_v24 = vsel %vm41_vm7, %v219_v21, %v222_v23 }
 0x1b7   :  { %428 = vtanh.f32 %v223_v24 }
 0x1c1   :  { %v429_v25 = vpop.eup %428 }
 0x1c2   :  { %v225_v26 = vmul.f32 0.5, %v429_v25 }
 0x1c4   :  { %v226_v27 = vadd.f32 0.5, %v225_v26 }
 0x1c6   :  { %v227_v28 = vsel %vm41_vm7, %v429_v25, %v226_v27 }
 0x1c7   :  { %234 = vrot.lane.b32.xlu0 %v227_v28, %s485_s4  ;;  %v232_v32 = vmul.f32 %v230_v31, %v227_v28 }
 0x239   :  { %v235_v29 = vpop.permute.xlu0 %234 }
 0x23a   :  { %v237_v30 = vmul.f32 %v235_v29, %v227_v28 }
 0x23c   :  { %239 = vrot.lane.b32.xlu1 %v237_v30, %s484_s29 }
 0x2ae   :  { %v240_v33 = vpop.permute.xlu1 %239 }
 0x2af   :  { %v242_v34 = vadd.f32 %v240_v33, %v232_v32 }
 0x2b1   :  { %430 = vtanh.f32 %v242_v34 }
 0x2bb   :  { %v431_v38 = vpop.eup %430 }
 0x2bc   :  { %245 = vrot.lane.b32.xlu0 %v431_v38, %s486_s16 }
 0x2c0   :  { %338 = vrot.lane.b32.xlu0 %v242_v34, %s487_s17 }
 0x32e   :  { %v246_v39 = vpop.permute.xlu0 %245 }
 0x32f   :  { %v248_v40 = vmul.f32 %v246_v39, %v227_v28 }
 0x331   :  { %259 = vrot.lane.b32.xlu1 %v248_v40, %s488_s18 }
 0x332   :  { %v339_v41 = vpop.permute.xlu0 %338 }
 0x333   :  { %341 = vst.msk [vmem:[#allocation4] sm:$0xff] %vm261_vm8, %v339_v41 }
 0x3a3   :  { %v260_v42 = vpop.permute.xlu1 %259 }
 0x3a4   :  { %336 = vst.msk [vmem:[#allocation2] sm:$0xff] %vm261_vm8, %v260_v42  ;;  %409 = vmatmul.mubr.msk.f32.vlgmr.msra.gmra.mrb[2].mxu0 %vm261_vm8, %v260_v42 }
 0x3a5   :  { %443 = shalt.err (!%p440_p4)
}
 0x3a6   :  { %s444_s24 = scalar_lea.hbm %s628_s10, 128 }
 0x3a7   :  { %p445_p5 = scmp.ne.s32.totalorder %s628_s10, %s444_s24  ;;  %p448_p6 = scmp.lt.u32.totalorder %s444_s24, %s628_s10 }
 0x3a9   :  { %p450_p7 = pnand %p448_p6, %p445_p5 }
 0x3ab   :  { %453 = shalt.err (!%p450_p7)
}
 0x3ac   :  { %353 = dma.vmem_to_hbm [thread:$0]  %s351_s20, 128, %s628_s10, [#allocation3]  }
 0x3ad   :  { %s454_s29 = scalar_lea.vmem %s361_s21, 128  ;;  %p459_p9 = scmp.lt.s32.totalorder %s361_s21, %s361_s21 }
 0x3ae   :  { %p455_p8 = scmp.ne.s32.totalorder %s361_s21, %s454_s29  ;;  %p460_p10 = scmp.lt.s32.totalorder %s454_s29, %s454_s29 }
 0x3b0   :  { %p461_p11 = por %p460_p10, %p459_p9 }
 0x3b2   :  { %p462_p12 = pnand %p461_p11, %p455_p8 }
 0x3b4   :  { %465 = shalt.err (!%p462_p12)
}
 0x3b5   :  { %s466_s5 = scalar_lea.hbm %s629_s11, 128 }
 0x3b6   :  { %p467_p13 = scmp.ne.s32.totalorder %s629_s11, %s466_s5  ;;  %p470_p0 = scmp.lt.u32.totalorder %s466_s5, %s629_s11 }
 0x3b8   :  { %p472_p1 = pnand %p470_p0, %p467_p13 }
 0x3ba   :  { %475 = shalt.err (!%p472_p1)
}
 0x3bb   :  { %363 = dma.vmem_to_hbm [thread:$0]  %s361_s21, 128, %s629_s11, [#allocation5]   ;;  %v379_v43 = vld [vmem:[%s626_s8] ss:$0 sm:$0xff] }
 0x477   :  { %v330_v44 = vpop.f32.mrb[2].mxu0 }
 0x478   :  { %v331_v45 = vadd.f32 %v379_v43, %v330_v44  ;;  %v410_v46 = vpop.f32.mrb[3].mxu0 }
 0x47a   :  { %334 = vst.msk [vmem:[%s627_s9] sm:$0xff] %vm51_vm2, %v331_v45 }
 0x47b   :  { %476 = dma.done.wait [#allocation3], 128  }
 0x47c   :  { %477 = vsyncadd [#allocation3], 4294967168 }
 0x47d   :  { %478 = dma.done.wait [#allocation5], 128  }
 0x47e   :  { %479 = vsyncadd [#allocation5], 4294967168 }
 0x47f   :  { %372 = vsyncpa [#allocation3], 1 }
 0x480   :  { %373 = vsyncpa [#allocation5], 1 }

</bundles_post_ra>
